<compile_context>
chip_gen: v6e
topology: v6e:2x2x1
jax: 0.10.0
libtpu: 0.0.40
codegen_flags: <defaults>
</compile_context>

<pallas_src>
import jax
import jax.numpy as jnp
from jax.experimental import pallas as pl
from jax.experimental.pallas import tpu as pltpu

LANE = 128


def _round_up(x, m):
    return ((x + m - 1) // m) * m


def _sublane_quantum(dtype):
    # f32 -> 8, bf16 -> 16, int8/fp8 -> 32 (packed sublane tiling).
    return 8 * (4 // jnp.dtype(dtype).itemsize)


def _auto_block_b(B, cl_pad, O, in_itemsize, sub, vmem_limit_bytes):
    # Resident folded weight + bias (double-buffered by the default pipeline).
    fixed = 2 * (cl_pad * O + O) * 4
    # Per batch row: double-buffered input tile + double-buffered f32 output tile.
    per_row = 2 * (cl_pad * in_itemsize + O * 4)
    budget = int(vmem_limit_bytes * 0.75) - fixed        # headroom for compiler scratch
    bb = max(sub, budget // max(per_row, 1))
    bb = min(bb, 1024)                                    # 512-2048 rows already saturate HBM BW
    # Keep >= ~8 grid steps when B allows (pipelining + v7x megacore sharding).
    bb = min(bb, max(sub, _round_up(pl.cdiv(B, 8), sub)))
    bb = max(sub, (bb // sub) * sub)
    # Prefer a block that divides B exactly (avoids a whole-array batch-pad copy).
    d = bb
    while d >= sub:
        if B % d == 0:
            return d
        d -= sub
    return bb


def mlp_regressor_kernel(x_ref, m_ref, b_ref, o_ref):
    # x_ref: (TB, CL_pad) bf16/f32 -- SiLU input, lane-dense (CL_pad % 128 == 0)
    # m_ref: (CL_pad, O)  f32      -- AdaptiveAvgPool1d(1) (1/L) folded into conv weight
    # b_ref: (1, O)       f32
    # o_ref: (TB, O)      f32      -- true output width (no padded HBM writeback)
    x = x_ref[...].astype(jnp.float32)        # cheap VPU upcast; works on v5e/v6e/v7x
    s = x * jax.nn.sigmoid(x)                 # nn.SiLU (VPU + EUP)
    # Fused AdaptiveAvgPool1d(1) + Conv1d(k=1): a single MXU matmul over C*L.
    y = jnp.dot(s, m_ref[...], preferred_element_type=jnp.float32)
    # nn.Flatten(): (B, O, 1) -> (B, O); already (TB, O) here.
    o_ref[...] = (y + b_ref[...]).astype(o_ref.dtype)


def mlp_regressor_forward(x, w, b, *, block_b=None, vmem_limit_bytes=32 << 20,
                          transfer_dtype=jnp.bfloat16):
    """MLPRegressor(pool='adaptive') forward.

    x: (B, C, L), w: (O, C) (Conv1d kernel-size-1 weight, squeezed), b: (O,).
    Returns (B, O) float32.  x is moved HBM->VMEM as `transfer_dtype`
    (default bf16; pass jnp.float32 for exact-f32 transfers).
    """
    B, C, L = x.shape
    O = w.shape[0]
    CL = C * L

    # --- Fold AdaptiveAvgPool1d(1) into the conv weight (once, outside): M[c*L+l, o] = w[o,c]/L.
    m = jnp.repeat(w.T.astype(jnp.float32) / jnp.float32(L), L, axis=0)     # (C*L, O), f32
    b2 = b.astype(jnp.float32).reshape(1, O)

    # --- Flatten (C, L) onto the lane axis; pad to a lane multiple (zeros are inert:
    #     SiLU(0) == 0 and the matching M rows are zero).
    cl_pad = _round_up(CL, LANE)
    x2 = x.astype(transfer_dtype).reshape(B, CL)          # bf16 cast fuses with reshape/pad
    if cl_pad != CL:
        x2 = jnp.pad(x2, ((0, 0), (0, cl_pad - CL)))
        m = jnp.pad(m, ((0, cl_pad - CL), (0, 0)))

    # --- Guard: the VMEM-resident folded weight must actually fit the limit. ---
    resident_bytes = 2 * (cl_pad * O + O) * 4
    if resident_bytes > vmem_limit_bytes // 2:
        raise ValueError(
            f"folded weight ({resident_bytes} B double-buffered) exceeds half the VMEM "
            f"limit ({vmem_limit_bytes} B); add K tiling / on-chip pooling for this C*L")

    # --- Batch block: fit VMEM with headroom, keep enough grid steps, divide B if possible. ---
    sub = _sublane_quantum(transfer_dtype)
    if block_b is None:
        block_b = _auto_block_b(B, cl_pad, O, jnp.dtype(transfer_dtype).itemsize,
                                sub, vmem_limit_bytes)
    block_b = max(sub, (int(block_b) // sub) * sub)

    b_pad = _round_up(B, block_b)
    if b_pad != B:
        # Zero rows; sliced off below. Fuses with the cast pass above under jit.
        x2 = jnp.pad(x2, ((0, b_pad - B), (0, 0)))

    grid = (b_pad // block_b,)
    out = pl.pallas_call(
        mlp_regressor_kernel,
        out_shape=jax.ShapeDtypeStruct((b_pad, O), jnp.float32),
        grid_spec=pltpu.PrefetchScalarGridSpec(
            num_scalar_prefetch=0,
            grid=grid,
            in_specs=[
                pl.BlockSpec((block_b, cl_pad), lambda i: (i, 0)),
                pl.BlockSpec((cl_pad, O), lambda i: (0, 0)),   # weight stays VMEM-resident
                pl.BlockSpec((1, O), lambda i: (0, 0)),        # bias stays VMEM-resident
            ],
            out_specs=pl.BlockSpec((block_b, O), lambda i: (i, 0)),  # true-O writeback
        ),
        compiler_params=pltpu.CompilerParams(
            dimension_semantics=("parallel",),                 # megacore-shard the B loop
            vmem_limit_bytes=int(vmem_limit_bytes),            # explicit, matches block sizing
        ),
    )(x2, m, b2)

    return out[:B]


def reference_forward(x, w, b):
    s = x * jax.nn.sigmoid(x)
    pooled = jnp.mean(s, axis=-1)
    return pooled @ w.T + b[None, :]


if __name__ == "__main__":
    # Small shapes consistent with the module's forward: x is (N, ch, L).
    B, CH, L = 2, 8, 16          # C*L = 128 -> exactly one lane-dense vreg row
    OUT_CHANNELS = 2

    key = jax.random.PRNGKey(0)
    x = jax.random.normal(key, (B, CH, L), dtype=jnp.float32)

    # zero_module(conv_nd(1, ch, out_channels, 1)) zeroes the conv parameters,
    # so the faithful deterministic init is all-zeros (output is exactly zero).
    w = jnp.zeros((OUT_CHANNELS, CH), dtype=jnp.float32)
    b = jnp.zeros((OUT_CHANNELS,), dtype=jnp.float32)

    out = jax.block_until_ready(mlp_regressor_forward(x, w, b))
    assert out.shape == (B, OUT_CHANNELS)
    assert bool(jnp.allclose(out, 0.0)), "zero-init conv must give zero output"

    # Non-zero weights: compare against a reference computed on the same
    # bf16-transferred input (compute is f32 on both sides).
    k1, k2, k3 = jax.random.split(jax.random.PRNGKey(1), 3)
    w_nz = jax.random.normal(k1, (OUT_CHANNELS, CH), dtype=jnp.float32) * 0.1
    b_nz = jax.random.normal(k2, (OUT_CHANNELS,), dtype=jnp.float32) * 0.1
    x_bf = x.astype(jnp.bfloat16).astype(jnp.float32)
    got = jax.block_until_ready(mlp_regressor_forward(x, w_nz, b_nz))
    want = reference_forward(x_bf, w_nz, b_nz)
    assert bool(jnp.allclose(got, want, atol=1e-4, rtol=1e-4)), "kernel mismatch vs reference"

    # Multi-block gridded path (block divides B -> no batch-pad copy).
    xb = jax.random.normal(k3, (48, CH, L), dtype=jnp.float32)
    got_b = jax.block_until_ready(mlp_regressor_forward(xb, w_nz, b_nz, block_b=16))
    want_b = reference_forward(xb.astype(jnp.bfloat16).astype(jnp.float32), w_nz, b_nz)
    assert bool(jnp.allclose(got_b, want_b, atol=1e-4, rtol=1e-4)), "gridded kernel mismatch"

    # Exact-f32 transfer path (strict precision / v5e users who prefer f32 in HBM).
    got_f = jax.block_until_ready(
        mlp_regressor_forward(x, w_nz, b_nz, transfer_dtype=jnp.float32))
    want_f = reference_forward(x, w_nz, b_nz)
    assert bool(jnp.allclose(got_f, want_f, atol=1e-5, rtol=1e-5)), "f32 path mismatch"

    print("KERNEL_OK")
</pallas_src>

<mosaic_0001>
module attributes {stable_mosaic.version = 11 : i64} {
  func.func @mlp_regressor_kernel(%arg0: i32, %arg1: memref<16x128xbf16, #tpu.memory_space<vmem>>, %arg2: memref<128x2xf32, #tpu.memory_space<vmem>>, %arg3: memref<1x2xf32, #tpu.memory_space<vmem>>, %arg4: memref<16x2xf32, #tpu.memory_space<vmem>>) attributes {dimension_semantics = [#tpu.dimension_semantics<parallel>], iteration_bounds = array<i64: 1>, scalar_prefetch = 0 : i64, scratch_operands = 0 : i64, tpu.core_type = #tpu.core_type<tc>, window_params = [{transform_indices = @transform_0, window_bounds = array<i64: 16, 128>}, {pipeline_mode = #tpu.pipeline_mode<synchronous>, transform_indices = @transform_1, window_bounds = array<i64: 128, 2>}, {pipeline_mode = #tpu.pipeline_mode<synchronous>, transform_indices = @transform_2, window_bounds = array<i64: 1, 2>}, {transform_indices = @transform_3, window_bounds = array<i64: 16, 2>}]} {
    %c0 = arith.constant 0 : index
    %c0_0 = arith.constant 0 : index
    %0 = vector.load %arg1[%c0, %c0_0] : memref<16x128xbf16, #tpu.memory_space<vmem>>, vector<16x128xbf16>
    %1 = arith.extf %0 : vector<16x128xbf16> to vector<16x128xf32>
    %2 = arith.negf %1 : vector<16x128xf32>
    %3 = math.exp %2 : vector<16x128xf32>
    %cst = arith.constant 1.000000e+00 : f32
    %4 = vector.broadcast %cst : f32 to vector<16x128xf32>
    %5 = arith.addf %4, %3 : vector<16x128xf32>
    %6 = arith.divf %4, %5 : vector<16x128xf32>
    %7 = arith.mulf %1, %6 : vector<16x128xf32>
    %c0_1 = arith.constant 0 : index
    %c0_2 = arith.constant 0 : index
    %8 = vector.load %arg2[%c0_1, %c0_2] : memref<128x2xf32, #tpu.memory_space<vmem>>, vector<128x2xf32>
    %cst_3 = arith.constant dense<0.000000e+00> : vector<16x2xf32>
    %9 = tpu.matmul %7, %8, %cst_3 {dimension_numbers = #tpu.dot_dimension_numbers<[1], [0], [0], [1], [0, 0, 1, 1], [], []>} : vector<16x128xf32>, vector<128x2xf32>, vector<16x2xf32> -> vector<16x2xf32>
    %c0_4 = arith.constant 0 : index
    %c0_5 = arith.constant 0 : index
    %10 = vector.load %arg3[%c0_4, %c0_5] : memref<1x2xf32, #tpu.memory_space<vmem>>, vector<1x2xf32>
    %11 = vector.broadcast %10 : vector<1x2xf32> to vector<16x2xf32>
    %12 = arith.addf %9, %11 : vector<16x2xf32>
    %c0_6 = arith.constant 0 : index
    %c0_7 = arith.constant 0 : index
    %13 = vector.load %arg4[%c0_6, %c0_7] : memref<16x2xf32, #tpu.memory_space<vmem>>, vector<16x2xf32>
    tpu.vector_store %arg4[%c0_6, %c0_7], %12 {strides = array<i32>} : memref<16x2xf32, #tpu.memory_space<vmem>>, vector<16x2xf32>,
    return
  }
  func.func @transform_0(%arg0: i32) -> (i32, i32) {
    %c0_i32 = arith.constant 0 : i32
    %c0_i32_0 = arith.constant 0 : i32
    return %arg0, %c0_i32 : i32, i32
  }
  func.func @transform_1(%arg0: i32) -> (i32, i32) {
    %c0_i32 = arith.constant 0 : i32
    %c0_i32_0 = arith.constant 0 : i32
    %c0_i32_1 = arith.constant 0 : i32
    return %c0_i32, %c0_i32_0 : i32, i32
  }
  func.func @transform_2(%arg0: i32) -> (i32, i32) {
    %c0_i32 = arith.constant 0 : i32
    %c0_i32_0 = arith.constant 0 : i32
    %c0_i32_1 = arith.constant 0 : i32
    return %c0_i32, %c0_i32_0 : i32, i32
  }
  func.func @transform_3(%arg0: i32) -> (i32, i32) {
    %c0_i32 = arith.constant 0 : i32
    %c0_i32_0 = arith.constant 0 : i32
    return %arg0, %c0_i32 : i32, i32
  }
}

</mosaic_0001>

<bundles_post_ra>
// kernel: tpu_custom_call.1
= control target key start
LH: loop header
LB: loop body
LE: loop exit
PB: predicated region body
PF: predicated region fallthrough
CT: control target
= control target key end

     0   :  { %vm130_vm0 = vcmask 15360   ;;  %s285_s1 = inlined_call_operand.vmem [shape: f32[128,2], index: 1, kind: input, shape index: {}]   ;;  %s286_s0 = inlined_call_operand.vmem [shape: bf16[16,128], index: 0, kind: input, shape index: {}]   ;;  %s287_s2 = inlined_call_operand.vmem [shape: f32[1,2], index: 2, kind: input, shape index: {}]   ;;  %s288_s3 = inlined_call_operand.vmem [shape: f32[16,2], index: 3, kind: output, shape index: {}]  }
   0x1   :  { %v47_v0 = vld [vmem:[%s285_s1 + $0x78] sm:$0xff]  ;;  %v46_v1 = vld [vmem:[%s285_s1 + $0x70] sm:$0xff]  ;;  %v45_v2 = vld [vmem:[%s285_s1 + $0x68] sm:$0xff] }
   0x2   :  { %162 = vmatprep.subr.mxu0 %v47_v0  ;;  %v44_v3 = vld [vmem:[%s285_s1 + $0x60] sm:$0xff]  ;;  %v43_v5 = vld [vmem:[%s285_s1 + $0x58] sm:$0xff]  ;;  %v42_v8 = vld [vmem:[%s285_s1 + $0x50] sm:$0xff] }
   0x3   :  { %163 = vmatpush3.msra.mxu0 %v47_v0  ;;  %v141_v4 = vld [vmem:[%s286_s0] sm:$0xff]   ;;  %v41_v11 = vld [vmem:[%s285_s1 + $0x48] sm:$0xff]  ;;  %v39_v13 = vld [vmem:[%s285_s1 + $0x38] sm:$0xff] }
   0x4   :  { %164 = vmatprep.subr.mxu0 %v46_v1  ;;  %v142_v6 = vunpack.c.l.bf16 %v141_v4  ;;  %v143_v7 = vunpack.c.h.bf16 %v141_v4  ;;  %v40_v12 = vld [vmem:[%s285_s1 + $0x40] sm:$0xff]  ;;  %v38_v14 = vld [vmem:[%s285_s1 + $0x30] sm:$0xff]  ;;  %v37_v15 = vld [vmem:[%s285_s1 + $0x28] sm:$0xff] }
   0x5   :  { %165 = vmatpush3.msra.mxu0 %v46_v1  ;;  %v36_v16 = vld [vmem:[%s285_s1 + $0x20] sm:$0xff]  ;;  %v35_v17 = vld [vmem:[%s285_s1 + $0x18] sm:$0xff]  ;;  %v34_v20 = vld [vmem:[%s285_s1 + $0x10] sm:$0xff] }
   0x6   :  { %166 = vmatprep.subr.mxu0 %v45_v2  ;;  %v137_v9 = vmul.f32 -1.442695, %v142_v6  ;;  %v138_v10 = vmul.f32 -1.442695, %v143_v7  ;;  %v33_v23 = vld [vmem:[%s285_s1 + $0x8] sm:$0xff]  ;;  %v32_v24 = vld [vmem:[%s285_s1] sm:$0xff] }
   0x7   :  { %167 = vmatpush3.msra.mxu0 %v45_v2  ;;  %v139_v29 = vld [vmem:[%s287_s2] ss:$0 sm:$0xff] }
   0x8   :  { %168 = vmatprep.subr.mxu0 %v44_v3  ;;  %197 = vpow2.f32 %v137_v9 }
   0x9   :  { %169 = vmatpush3.msra.mxu0 %v44_v3  ;;  %199 = vpow2.f32 %v138_v10 }
   0xa   :  { %170 = vmatprep.subr.mxu0 %v43_v5 }
   0xb   :  { %171 = vmatpush3.msra.mxu0 %v43_v5 }
   0xc   :  { %172 = vmatprep.subr.mxu0 %v42_v8 }
   0xd   :  { %173 = vmatpush3.msra.mxu0 %v42_v8 }
   0xe   :  { %174 = vmatprep.subr.mxu0 %v41_v11 }
   0xf   :  { %175 = vmatpush3.msra.mxu0 %v41_v11 }
  0x10   :  { %176 = vmatprep.subr.mxu0 %v40_v12 }
  0x11   :  { %177 = vmatpush3.msra.mxu0 %v40_v12 }
  0x12   :  { %178 = vmatprep.subr.mxu0 %v39_v13 }
  0x13   :  { %179 = vmatpush3.msra.mxu0 %v39_v13 }
  0x14   :  { %180 = vmatprep.subr.mxu0 %v38_v14 }
  0x15   :  { %181 = vmatpush3.msra.mxu0 %v38_v14  ;;  %v198_v18 = vpop.eup %197 }
  0x16   :  { %182 = vmatprep.subr.mxu0 %v37_v15  ;;  %v200_v19 = vpop.eup %199  ;;  %v24_v21 = vadd.f32 1.0, %v198_v18 }
  0x17   :  { %183 = vmatpush3.msra.mxu0 %v37_v15  ;;  %v25_v22 = vadd.f32 1.0, %v200_v19 }
  0x18   :  { %184 = vmatprep.subr.mxu0 %v36_v16  ;;  %201 = vrcp.f32 %v24_v21 }
  0x19   :  { %185 = vmatpush3.msra.mxu0 %v36_v16  ;;  %203 = vrcp.f32 %v25_v22 }
  0x1a   :  { %186 = vmatprep.subr.mxu0 %v35_v17 }
  0x1b   :  { %187 = vmatpush3.msra.mxu0 %v35_v17 }
  0x1c   :  { %188 = vmatprep.subr.mxu0 %v34_v20 }
  0x1d   :  { %189 = vmatpush3.msra.mxu0 %v34_v20 }
  0x1e   :  { %190 = vmatprep.subr.mxu0 %v33_v23 }
  0x1f   :  { %191 = vmatpush3.msra.mxu0 %v33_v23 }
  0x20   :  { %192 = vmatprep.subr.mxu0 %v32_v24 }
  0x21   :  { %193 = vmatpush3.msra.mxu0 %v32_v24 }
  0x25   :  { %v202_v25 = vpop.eup %201 }
  0x26   :  { %v204_v26 = vpop.eup %203  ;;  %v30_v27 = vmul.f32 %v202_v25, %v142_v6 }
  0x27   :  { %v31_v28 = vmul.f32 %v204_v26, %v143_v7 }
  0x28   :  { %194 = vmatprep.mubr.f32.mxu0 %v30_v27 }
  0x29   :  { %195 = vmatmul.mubr.f32.vlgmr.msra.gmra.mxu0 %v31_v28 }
  0xe9   :  { %v196_v30 = vpop.f32.mrf.mxu0 }
  0xea   :  { %v127_v31 = vadd.f32 %v196_v30, %v139_v29 }
  0xeb   :  { %v121_v32 = vpop.f32.mrf.mxu0 }
  0xec   :  { %132 = vst.msk [vmem:[%s288_s3 + $0x8] sm:$0xff] %vm130_vm0, %v127_v31  ;;  %v122_v33 = vadd.f32 %v139_v29, %v121_v32 }
  0xee   :  { %131 = vst.msk [vmem:[%s288_s3] sm:$0xff] %vm130_vm0, %v122_v33 }

</bundles_post_ra>
